<compile_context>
chip_gen: v5e
topology: v5e:2x2
jax: 0.10.0
libtpu: 0.0.40
codegen_flags: <defaults>
</compile_context>

<pallas_src>
import functools

import jax
import jax.numpy as jnp
from jax.experimental import pallas as pl
from jax.experimental.pallas import tpu as pltpu


def _ceil_to(x, m):
    return ((x + m - 1) // m) * m


# ----------------------------------------------------------------------------
# Fused Pallas kernel: L-layer LSTM over the whole sequence + Linear on h_n.
# ----------------------------------------------------------------------------
def _fused_lstm_fc_kernel(emb_ref, w_ref, b_ref, fcw_ref, fcb_ref,
                          out_ref, hn_ref, cn_ref):
    """All refs live fully in VMEM (no grid).

    emb_ref : (S, BP, P)   embedded input sequence (dropout = identity)
    w_ref   : (L, 2P, 4P)  per layer, concat([W_ih^T ; W_hh^T]), gate-blocked at P
    b_ref   : (L, 1, 4P)   per layer, b_ih + b_hh, gate-blocked at P
    fcw_ref : (P, OP)      fc weight (transposed, zero-padded)
    fcb_ref : (1, OP)      fc bias (zero-padded)
    out_ref : (L, BP, OP)  fc(h_n)
    hn_ref  : (L, BP, P)   final hidden state per layer
    cn_ref  : (L, BP, P)   final cell state per layer
    """
    S, BP, _ = emb_ref.shape
    L, _, P = hn_ref.shape

    def step(t, carry):
        hs, cs = carry
        x = emb_ref[t]                                          # (BP, P)
        new_hs, new_cs = [], []
        for l in range(L):
            # Single fused matmul per layer: [x ; h_{t-1}] @ [W_ih ; W_hh].
            xh = jnp.concatenate([x, hs[l]], axis=1)            # (BP, 2P)
            gates = (jnp.dot(xh, w_ref[l],
                             preferred_element_type=jnp.float32)
                     + b_ref[l])                                # (BP, 4P)
            # PyTorch gate order i, f, g, o; each block is a lane-aligned
            # (BP, 128)-multiple slab (no sub-vreg lane extraction).
            i_g = jax.nn.sigmoid(gates[:, 0 * P:1 * P])
            f_g = jax.nn.sigmoid(gates[:, 1 * P:2 * P])
            g_g = jnp.tanh(gates[:, 2 * P:3 * P])
            o_g = jax.nn.sigmoid(gates[:, 3 * P:4 * P])
            c_new = f_g * cs[l] + i_g * g_g
            h_new = o_g * jnp.tanh(c_new)
            new_hs.append(h_new)
            new_cs.append(c_new)
            # Inter-layer Dropout(0.5): eval-mode identity.
            x = h_new
        return tuple(new_hs), tuple(new_cs)

    z = jnp.zeros((BP, P), jnp.float32)
    init = (tuple(z for _ in range(L)), tuple(z for _ in range(L)))
    hs, cs = jax.lax.fori_loop(0, S, step, init)

    fcw = fcw_ref[...]
    fcb = fcb_ref[...]
    for l in range(L):
        hn_ref[l] = hs[l]
        cn_ref[l] = cs[l]
        out_ref[l] = (jnp.dot(hs[l], fcw,
                              preferred_element_type=jnp.float32) + fcb)


# ----------------------------------------------------------------------------
# Wrapper: packing/padding + single pallas_call.
# ----------------------------------------------------------------------------
def lstm_model_forward(x_tokens, params, *, num_layers):
    """Mirrors LSTMModel.forward (eval mode).

    x_tokens: (S, B) int32 token ids (batch_first=False convention of nn.LSTM).
    Returns (output, (h_n, c_n)) with
      output: (num_layers, B, output_size), h_n/c_n: (num_layers, B, hidden).
    """
    S, B = x_tokens.shape
    emb_table = params["embedding"]
    E = emb_table.shape[1]
    H = params["w_hh_l0"].shape[1]
    O = params["fc_w"].shape[0]
    L = num_layers

    # Padded kernel-facing dims: lane-dense features, sublane-dense batch.
    P = max(_ceil_to(E, 128), _ceil_to(H, 128))
    BP = _ceil_to(B, 8)
    OP = _ceil_to(O, 128)

    # Embedding gather (plain JAX) + Dropout(0.5) eval-mode identity.
    emb = jnp.take(emb_table, x_tokens, axis=0)                 # (S, B, E)
    emb = jnp.pad(emb, ((0, 0), (0, BP - B), (0, P - E)))       # (S, BP, P)

    # Pack per-layer concat([W_ih^T ; W_hh^T]) with gate blocks padded to P.
    # Padded gate lanes get zero weights and zero bias, so padded h/c lanes
    # stay exactly 0 throughout the recurrence.
    w_list, b_list = [], []
    for l in range(L):
        d_in = E if l == 0 else H
        w_ih = params[f"w_ih_l{l}"]                             # (4H, d_in)
        w_hh = params[f"w_hh_l{l}"]                             # (4H, H)
        bsum = params[f"b_ih_l{l}"] + params[f"b_hh_l{l}"]      # (4H,)
        wc = jnp.zeros((2 * P, 4 * P), jnp.float32)
        bc = jnp.zeros((4 * P,), jnp.float32)
        for k in range(4):
            wc = wc.at[:d_in, k * P:k * P + H].set(
                jnp.transpose(w_ih[k * H:(k + 1) * H, :]))
            wc = wc.at[P:P + H, k * P:k * P + H].set(
                jnp.transpose(w_hh[k * H:(k + 1) * H, :]))
            bc = bc.at[k * P:k * P + H].set(bsum[k * H:(k + 1) * H])
        w_list.append(wc)
        b_list.append(bc.reshape(1, 4 * P))
    w_all = jnp.stack(w_list, axis=0)                           # (L, 2P, 4P)
    b_all = jnp.stack(b_list, axis=0)                           # (L, 1, 4P)

    fcw = jnp.zeros((P, OP), jnp.float32).at[:H, :O].set(
        jnp.transpose(params["fc_w"]))
    fcb = jnp.zeros((1, OP), jnp.float32).at[0, :O].set(params["fc_b"])

    out_shapes = (
        jax.ShapeDtypeStruct((L, BP, OP), jnp.float32),
        jax.ShapeDtypeStruct((L, BP, P), jnp.float32),
        jax.ShapeDtypeStruct((L, BP, P), jnp.float32),
    )
    output_p, hn_p, cn_p = pl.pallas_call(
        _fused_lstm_fc_kernel,
        out_shape=out_shapes,
        compiler_params=pltpu.CompilerParams(
            vmem_limit_bytes=32 * 1024 * 1024),
    )(emb, w_all, b_all, fcw, fcb)

    # Slice the padding back off.
    output = output_p[:, :B, :O]
    h_n = hn_p[:, :B, :H]
    c_n = cn_p[:, :B, :H]
    return output, (h_n, c_n)


# ----------------------------------------------------------------------------
# Deterministic parameter init (shapes per LSTMModel.__init__)
# ----------------------------------------------------------------------------
def init_params(key, vocab_size, output_size, embedding_dim, hidden_dim,
                num_layers):
    params = {}
    k_scale = 1.0 / jnp.sqrt(hidden_dim)
    keys = jax.random.split(key, 2 + 4 * num_layers + 2)
    it = iter(keys)

    params["embedding"] = jax.random.normal(
        next(it), (vocab_size, embedding_dim), jnp.float32)

    for layer in range(num_layers):
        in_dim = embedding_dim if layer == 0 else hidden_dim
        params[f"w_ih_l{layer}"] = jax.random.uniform(
            next(it), (4 * hidden_dim, in_dim), jnp.float32, -k_scale, k_scale)
        params[f"w_hh_l{layer}"] = jax.random.uniform(
            next(it), (4 * hidden_dim, hidden_dim), jnp.float32, -k_scale, k_scale)
        params[f"b_ih_l{layer}"] = jax.random.uniform(
            next(it), (4 * hidden_dim,), jnp.float32, -k_scale, k_scale)
        params[f"b_hh_l{layer}"] = jax.random.uniform(
            next(it), (4 * hidden_dim,), jnp.float32, -k_scale, k_scale)

    params["fc_w"] = jax.random.uniform(
        next(it), (output_size, hidden_dim), jnp.float32, -k_scale, k_scale)
    params["fc_b"] = jax.random.uniform(
        next(it), (output_size,), jnp.float32, -k_scale, k_scale)
    return params


# ----------------------------------------------------------------------------
if __name__ == "__main__":
    vocab_size = 50      # input_size (text vocab)
    output_size = 10
    embedding_dim = 32
    hidden_dim = 32
    num_layers = 2
    seq_len, batch = 8, 4

    key = jax.random.PRNGKey(0)
    k_params, k_x = jax.random.split(key)

    params = init_params(k_params, vocab_size, output_size, embedding_dim,
                         hidden_dim, num_layers)
    # x: (seq, batch) token ids (batch_first=False convention of nn.LSTM)
    x = jax.random.randint(k_x, (seq_len, batch), 0, vocab_size,
                           dtype=jnp.int32)

    fwd = jax.jit(functools.partial(lstm_model_forward, num_layers=num_layers))
    output, (h_n, c_n) = fwd(x, params)
    jax.block_until_ready((output, h_n, c_n))

    assert output.shape == (num_layers, batch, output_size)
    assert h_n.shape == (num_layers, batch, hidden_dim)
    assert c_n.shape == (num_layers, batch, hidden_dim)
    print("KERNEL_OK")
</pallas_src>

<mosaic_0001>
module attributes {stable_mosaic.version = 11 : i64} {
  func.func @_fused_lstm_fc_kernel(%arg0: memref<8x8x128xf32, #tpu.memory_space<vmem>>, %arg1: memref<2x256x512xf32, #tpu.memory_space<vmem>>, %arg2: memref<2x1x512xf32, #tpu.memory_space<vmem>>, %arg3: memref<128x128xf32, #tpu.memory_space<vmem>>, %arg4: memref<1x128xf32, #tpu.memory_space<vmem>>, %arg5: memref<2x8x128xf32, #tpu.memory_space<vmem>>, %arg6: memref<2x8x128xf32, #tpu.memory_space<vmem>>, %arg7: memref<2x8x128xf32, #tpu.memory_space<vmem>>) attributes {dimension_semantics = [], scalar_prefetch = 0 : i64, scratch_operands = 0 : i64, tpu.core_type = #tpu.core_type<tc>} {
    %cst = arith.constant 0.000000e+00 : f32
    %0 = vector.broadcast %cst : f32 to vector<8x128xf32>
    %c0_i32 = arith.constant 0 : i32
    %c8_i32 = arith.constant 8 : i32
    %1 = arith.addi %c0_i32, %c8_i32 : i32
    %c1_i32 = arith.constant 1 : i32
    %2:4 = scf.for %arg8 = %c0_i32 to %1 step %c1_i32 iter_args(%arg9 = %0, %arg10 = %0, %arg11 = %0, %arg12 = %0) -> (vector<8x128xf32>, vector<8x128xf32>, vector<8x128xf32>, vector<8x128xf32>)  : i32 {
      %29 = arith.index_cast %arg8 : i32 to index
      %c0_23 = arith.constant 0 : index
      %c0_24 = arith.constant 0 : index
      %30 = vector.load %arg0[%29, %c0_23, %c0_24] : memref<8x8x128xf32, #tpu.memory_space<vmem>>, vector<1x8x128xf32>
      %31 = vector.shape_cast %30 : vector<1x8x128xf32> to vector<8x128xf32>
      %32 = tpu.concatenate %31, %arg9 in 1 : vector<8x128xf32>, vector<8x128xf32> -> vector<8x256xf32>
      %c0_25 = arith.constant 0 : index
      %c0_26 = arith.constant 0 : index
      %c0_27 = arith.constant 0 : index
      %33 = vector.load %arg1[%c0_25, %c0_26, %c0_27] : memref<2x256x512xf32, #tpu.memory_space<vmem>>, vector<1x256x512xf32>
      %34 = vector.shape_cast %33 : vector<1x256x512xf32> to vector<256x512xf32>
      %cst_28 = arith.constant dense<0.000000e+00> : vector<8x512xf32>
      %35 = tpu.matmul %32, %34, %cst_28 {dimension_numbers = #tpu.dot_dimension_numbers<[1], [0], [0], [1], [0, 0, 1, 1], [], []>} : vector<8x256xf32>, vector<256x512xf32>, vector<8x512xf32> -> vector<8x512xf32>
      %c0_29 = arith.constant 0 : index
      %c0_30 = arith.constant 0 : index
      %c0_31 = arith.constant 0 : index
      %36 = vector.load %arg2[%c0_29, %c0_30, %c0_31] : memref<2x1x512xf32, #tpu.memory_space<vmem>>, vector<1x1x512xf32>
      %37 = vector.shape_cast %36 : vector<1x1x512xf32> to vector<1x512xf32>
      %38 = vector.broadcast %37 : vector<1x512xf32> to vector<8x512xf32>
      %39 = arith.addf %35, %38 : vector<8x512xf32>
      %40 = vector.extract_strided_slice %39 {offsets = [0, 0], sizes = [8, 128], strides = [1, 1]} : vector<8x512xf32> to vector<8x128xf32>
      %41 = arith.negf %40 : vector<8x128xf32>
      %42 = math.exp %41 : vector<8x128xf32>
      %cst_32 = arith.constant 1.000000e+00 : f32
      %43 = vector.broadcast %cst_32 : f32 to vector<8x128xf32>
      %44 = arith.addf %43, %42 : vector<8x128xf32>
      %45 = arith.divf %43, %44 : vector<8x128xf32>
      %46 = vector.extract_strided_slice %39 {offsets = [0, 128], sizes = [8, 128], strides = [1, 1]} : vector<8x512xf32> to vector<8x128xf32>
      %47 = arith.negf %46 : vector<8x128xf32>
      %48 = math.exp %47 : vector<8x128xf32>
      %cst_33 = arith.constant 1.000000e+00 : f32
      %49 = vector.broadcast %cst_33 : f32 to vector<8x128xf32>
      %50 = arith.addf %49, %48 : vector<8x128xf32>
      %51 = arith.divf %49, %50 : vector<8x128xf32>
      %52 = vector.extract_strided_slice %39 {offsets = [0, 256], sizes = [8, 128], strides = [1, 1]} : vector<8x512xf32> to vector<8x128xf32>
      %53 = math.tanh %52 : vector<8x128xf32>
      %54 = vector.extract_strided_slice %39 {offsets = [0, 384], sizes = [8, 128], strides = [1, 1]} : vector<8x512xf32> to vector<8x128xf32>
      %55 = arith.negf %54 : vector<8x128xf32>
      %56 = math.exp %55 : vector<8x128xf32>
      %cst_34 = arith.constant 1.000000e+00 : f32
      %57 = vector.broadcast %cst_34 : f32 to vector<8x128xf32>
      %58 = arith.addf %57, %56 : vector<8x128xf32>
      %59 = arith.divf %57, %58 : vector<8x128xf32>
      %60 = arith.mulf %51, %arg11 : vector<8x128xf32>
      %61 = arith.mulf %45, %53 : vector<8x128xf32>
      %62 = arith.addf %60, %61 : vector<8x128xf32>
      %63 = math.tanh %62 : vector<8x128xf32>
      %64 = arith.mulf %59, %63 : vector<8x128xf32>
      %65 = tpu.concatenate %64, %arg10 in 1 : vector<8x128xf32>, vector<8x128xf32> -> vector<8x256xf32>
      %c1_35 = arith.constant 1 : index
      %c0_36 = arith.constant 0 : index
      %c0_37 = arith.constant 0 : index
      %66 = vector.load %arg1[%c1_35, %c0_36, %c0_37] : memref<2x256x512xf32, #tpu.memory_space<vmem>>, vector<1x256x512xf32>
      %67 = vector.shape_cast %66 : vector<1x256x512xf32> to vector<256x512xf32>
      %cst_38 = arith.constant dense<0.000000e+00> : vector<8x512xf32>
      %68 = tpu.matmul %65, %67, %cst_38 {dimension_numbers = #tpu.dot_dimension_numbers<[1], [0], [0], [1], [0, 0, 1, 1], [], []>} : vector<8x256xf32>, vector<256x512xf32>, vector<8x512xf32> -> vector<8x512xf32>
      %c1_39 = arith.constant 1 : index
      %c0_40 = arith.constant 0 : index
      %c0_41 = arith.constant 0 : index
      %69 = vector.load %arg2[%c1_39, %c0_40, %c0_41] : memref<2x1x512xf32, #tpu.memory_space<vmem>>, vector<1x1x512xf32>
      %70 = vector.shape_cast %69 : vector<1x1x512xf32> to vector<1x512xf32>
      %71 = vector.broadcast %70 : vector<1x512xf32> to vector<8x512xf32>
      %72 = arith.addf %68, %71 : vector<8x512xf32>
      %73 = vector.extract_strided_slice %72 {offsets = [0, 0], sizes = [8, 128], strides = [1, 1]} : vector<8x512xf32> to vector<8x128xf32>
      %74 = arith.negf %73 : vector<8x128xf32>
      %75 = math.exp %74 : vector<8x128xf32>
      %cst_42 = arith.constant 1.000000e+00 : f32
      %76 = vector.broadcast %cst_42 : f32 to vector<8x128xf32>
      %77 = arith.addf %76, %75 : vector<8x128xf32>
      %78 = arith.divf %76, %77 : vector<8x128xf32>
      %79 = vector.extract_strided_slice %72 {offsets = [0, 128], sizes = [8, 128], strides = [1, 1]} : vector<8x512xf32> to vector<8x128xf32>
      %80 = arith.negf %79 : vector<8x128xf32>
      %81 = math.exp %80 : vector<8x128xf32>
      %cst_43 = arith.constant 1.000000e+00 : f32
      %82 = vector.broadcast %cst_43 : f32 to vector<8x128xf32>
      %83 = arith.addf %82, %81 : vector<8x128xf32>
      %84 = arith.divf %82, %83 : vector<8x128xf32>
      %85 = vector.extract_strided_slice %72 {offsets = [0, 256], sizes = [8, 128], strides = [1, 1]} : vector<8x512xf32> to vector<8x128xf32>
      %86 = math.tanh %85 : vector<8x128xf32>
      %87 = vector.extract_strided_slice %72 {offsets = [0, 384], sizes = [8, 128], strides = [1, 1]} : vector<8x512xf32> to vector<8x128xf32>
      %88 = arith.negf %87 : vector<8x128xf32>
      %89 = math.exp %88 : vector<8x128xf32>
      %cst_44 = arith.constant 1.000000e+00 : f32
      %90 = vector.broadcast %cst_44 : f32 to vector<8x128xf32>
      %91 = arith.addf %90, %89 : vector<8x128xf32>
      %92 = arith.divf %90, %91 : vector<8x128xf32>
      %93 = arith.mulf %84, %arg12 : vector<8x128xf32>
      %94 = arith.mulf %78, %86 : vector<8x128xf32>
      %95 = arith.addf %93, %94 : vector<8x128xf32>
      %96 = math.tanh %95 : vector<8x128xf32>
      %97 = arith.mulf %92, %96 : vector<8x128xf32>
      scf.yield %64, %97, %62, %95 : vector<8x128xf32>, vector<8x128xf32>, vector<8x128xf32>, vector<8x128xf32>
    }
    %c8_i32_0 = arith.constant 8 : i32
    %c0 = arith.constant 0 : index
    %c0_1 = arith.constant 0 : index
    %3 = vector.load %arg3[%c0, %c0_1] : memref<128x128xf32, #tpu.memory_space<vmem>>, vector<128x128xf32>
    %c0_2 = arith.constant 0 : index
    %c0_3 = arith.constant 0 : index
    %4 = vector.load %arg4[%c0_2, %c0_3] : memref<1x128xf32, #tpu.memory_space<vmem>>, vector<1x128xf32>
    %c0_4 = arith.constant 0 : index
    %c0_5 = arith.constant 0 : index
    %c0_6 = arith.constant 0 : index
    %5 = vector.load %arg6[%c0_4, %c0_5, %c0_6] : memref<2x8x128xf32, #tpu.memory_space<vmem>>, vector<1x8x128xf32>
    %6 = vector.shape_cast %5 : vector<1x8x128xf32> to vector<8x128xf32>
    %7 = vector.shape_cast %2#0 : vector<8x128xf32> to vector<1x8x128xf32>
    tpu.vector_store %arg6[%c0_4, %c0_5, %c0_6], %7 {strides = array<i32>} : memref<2x8x128xf32, #tpu.memory_space<vmem>>, vector<1x8x128xf32>,
    %c0_7 = arith.constant 0 : index
    %c0_8 = arith.constant 0 : index
    %c0_9 = arith.constant 0 : index
    %8 = vector.load %arg7[%c0_7, %c0_8, %c0_9] : memref<2x8x128xf32, #tpu.memory_space<vmem>>, vector<1x8x128xf32>
    %9 = vector.shape_cast %8 : vector<1x8x128xf32> to vector<8x128xf32>
    %10 = vector.shape_cast %2#2 : vector<8x128xf32> to vector<1x8x128xf32>
    tpu.vector_store %arg7[%c0_7, %c0_8, %c0_9], %10 {strides = array<i32>} : memref<2x8x128xf32, #tpu.memory_space<vmem>>, vector<1x8x128xf32>,
    %cst_10 = arith.constant dense<0.000000e+00> : vector<8x128xf32>
    %11 = tpu.matmul %2#0, %3, %cst_10 {dimension_numbers = #tpu.dot_dimension_numbers<[1], [0], [0], [1], [0, 0, 1, 1], [], []>} : vector<8x128xf32>, vector<128x128xf32>, vector<8x128xf32> -> vector<8x128xf32>
    %12 = vector.broadcast %4 : vector<1x128xf32> to vector<8x128xf32>
    %13 = arith.addf %11, %12 : vector<8x128xf32>
    %c0_11 = arith.constant 0 : index
    %c0_12 = arith.constant 0 : index
    %c0_13 = arith.constant 0 : index
    %14 = vector.load %arg5[%c0_11, %c0_12, %c0_13] : memref<2x8x128xf32, #tpu.memory_space<vmem>>, vector<1x8x128xf32>
    %15 = vector.shape_cast %14 : vector<1x8x128xf32> to vector<8x128xf32>
    %16 = vector.shape_cast %13 : vector<8x128xf32> to vector<1x8x128xf32>
    tpu.vector_store %arg5[%c0_11, %c0_12, %c0_13], %16 {strides = array<i32>} : memref<2x8x128xf32, #tpu.memory_space<vmem>>, vector<1x8x128xf32>,
    %c1 = arith.constant 1 : index
    %c0_14 = arith.constant 0 : index
    %c0_15 = arith.constant 0 : index
    %17 = vector.load %arg6[%c1, %c0_14, %c0_15] : memref<2x8x128xf32, #tpu.memory_space<vmem>>, vector<1x8x128xf32>
    %18 = vector.shape_cast %17 : vector<1x8x128xf32> to vector<8x128xf32>
    %19 = vector.shape_cast %2#1 : vector<8x128xf32> to vector<1x8x128xf32>
    tpu.vector_store %arg6[%c1, %c0_14, %c0_15], %19 {strides = array<i32>} : memref<2x8x128xf32, #tpu.memory_space<vmem>>, vector<1x8x128xf32>,
    %c1_16 = arith.constant 1 : index
    %c0_17 = arith.constant 0 : index
    %c0_18 = arith.constant 0 : index
    %20 = vector.load %arg7[%c1_16, %c0_17, %c0_18] : memref<2x8x128xf32, #tpu.memory_space<vmem>>, vector<1x8x128xf32>
    %21 = vector.shape_cast %20 : vector<1x8x128xf32> to vector<8x128xf32>
    %22 = vector.shape_cast %2#3 : vector<8x128xf32> to vector<1x8x128xf32>
    tpu.vector_store %arg7[%c1_16, %c0_17, %c0_18], %22 {strides = array<i32>} : memref<2x8x128xf32, #tpu.memory_space<vmem>>, vector<1x8x128xf32>,
    %cst_19 = arith.constant dense<0.000000e+00> : vector<8x128xf32>
    %23 = tpu.matmul %2#1, %3, %cst_19 {dimension_numbers = #tpu.dot_dimension_numbers<[1], [0], [0], [1], [0, 0, 1, 1], [], []>} : vector<8x128xf32>, vector<128x128xf32>, vector<8x128xf32> -> vector<8x128xf32>
    %24 = vector.broadcast %4 : vector<1x128xf32> to vector<8x128xf32>
    %25 = arith.addf %23, %24 : vector<8x128xf32>
    %c1_20 = arith.constant 1 : index
    %c0_21 = arith.constant 0 : index
    %c0_22 = arith.constant 0 : index
    %26 = vector.load %arg5[%c1_20, %c0_21, %c0_22] : memref<2x8x128xf32, #tpu.memory_space<vmem>>, vector<1x8x128xf32>
    %27 = vector.shape_cast %26 : vector<1x8x128xf32> to vector<8x128xf32>
    %28 = vector.shape_cast %25 : vector<8x128xf32> to vector<1x8x128xf32>
    tpu.vector_store %arg5[%c1_20, %c0_21, %c0_22], %28 {strides = array<i32>} : memref<2x8x128xf32, #tpu.memory_space<vmem>>, vector<1x8x128xf32>,
    return
  }
}

</mosaic_0001>

<bundles_post_ra>
// kernel: lstm_model_forward.1
= control target key start
LH: loop header
LB: loop body
LE: loop exit
PB: predicated region body
PF: predicated region fallthrough
CT: control target
= control target key end

     0   :  { %v1152_v0 = vmov 0.0   ;;  %v1154_v1 = vmov 0.0   ;;  %v1156_v2 = vmov 0.0   ;;  %v1158_v3 = vmov 0.0   ;;  %s1160_s24 = smov 0   ;;  %s2119_s0 = inlined_call_operand.vmem [shape: f32[8,8,128], index: 0, kind: input, shape index: {}]   ;;  %s2120_s1 = inlined_call_operand.vmem [shape: f32[2,256,512], index: 1, kind: input, shape index: {}]   ;;  %s2121_s2 = inlined_call_operand.vmem [shape: f32[2,1,512], index: 2, kind: input, shape index: {}]   ;;  %s2122_s3 = inlined_call_operand.vmem [shape: f32[128,128], index: 3, kind: input, shape index: {}]   ;;  %s2123_s4 = inlined_call_operand.vmem [shape: f32[1,128], index: 4, kind: input, shape index: {}]   ;;  %s2124_s5 = inlined_call_operand.vmem [shape: f32[2,8,128], index: 5, kind: output, shape index: {0}]   ;;  %s2125_s6 = inlined_call_operand.vmem [shape: f32[2,8,128], index: 6, kind: output, shape index: {1}]   ;;  %s2126_s7 = inlined_call_operand.vmem [shape: f32[2,8,128], index: 7, kind: output, shape index: {2}]  }
   0x1 LB: > { %v97_v4 = vld [vmem:[%s2120_s1 + $0x1e8] sm:$0xff]  ;;  %v96_v7 = vld [vmem:[%s2120_s1 + $0x1e0] sm:$0xff]  ;;  %s860_s22 = sshll.u32 %s1110_s24, 3  ;;  %s28_s24 = sadd.s32 1, %s1110_s24   ;;  %s1110_s24 = sphi %s1160_s24, %s28_s24   ;;  %v1106_v3 = vphi %v1158_v3, %v2136_v3   ;;  %v1102_v2 = vphi %v1156_v2, %v2135_v2   ;;  %v1098_v1 = vphi %v1154_v1, %v2134_v1   ;;  %v1094_v0 = vphi %v1152_v0, %v2133_v0  }
   0x2   : > { %v93_v5 = vld [vmem:[%s2120_s1 + $0x1c8] sm:$0xff]  ;;  %214 = vmatpush.msra.mxu2 %v97_v4  ;;  %174 = vmatpush.msra.mxu0 %v96_v7  ;;  %v92_v10 = vld [vmem:[%s2120_s1 + $0x1c0] sm:$0xff]  ;;  %s34_s15 = scalar_lea.vmem %s2119_s0, %s860_s22  ;;  %p25_p0 = scmp.ge.s32.totalorder %s28_s24, 8  }
   0x3   : > { %v161_v6 = vld [vmem:[%s2120_s1 + $0x3e8] sm:$0xff]  ;;  %v160_v11 = vld [vmem:[%s2120_s1 + $0x3e0] sm:$0xff] }
   0x4   : > { %234 = vmatpush.msra.mxu3 %v161_v6  ;;  %v157_v8 = vld [vmem:[%s2120_s1 + $0x3c8] sm:$0xff]  ;;  %215 = vmatpush.msra.mxu2 %v93_v5  ;;  %v88_v13 = vld [vmem:[%s2120_s1 + $0x1a0] sm:$0xff]  ;;  %v99_v5 = vld [vmem:[%s2120_s1 + $0x1f8] sm:$0xff] }
   0x5   : > { %v89_v9 = vld [vmem:[%s2120_s1 + $0x1a8] sm:$0xff]  ;;  %v156_v14 = vld [vmem:[%s2120_s1 + $0x3c0] sm:$0xff]  ;;  %175 = vmatpush.msra.mxu0 %v92_v10  ;;  %194 = vmatpush.msra.mxu1 %v160_v11  ;;  %v98_v10 = vld [vmem:[%s2120_s1 + $0x1f0] sm:$0xff] }
   0x6   : > { %235 = vmatpush.msra.mxu3 %v157_v8  ;;  %v153_v12 = vld [vmem:[%s2120_s1 + $0x3a8] sm:$0xff]  ;;  %216 = vmatpush.msra.mxu2 %v89_v9  ;;  %v84_v17 = vld [vmem:[%s2120_s1 + $0x180] sm:$0xff]  ;;  %v163_v8 = vld [vmem:[%s2120_s1 + $0x3f8] sm:$0xff] }
   0x7   : > { %v85_v15 = vld [vmem:[%s2120_s1 + $0x188] sm:$0xff]  ;;  %v152_v18 = vld [vmem:[%s2120_s1 + $0x3a0] sm:$0xff]  ;;  %176 = vmatpush.msra.mxu0 %v88_v13  ;;  %195 = vmatpush.msra.mxu1 %v156_v14  ;;  %v95_v9 = vld [vmem:[%s2120_s1 + $0x1d8] sm:$0xff] }
   0x8   : > { %v149_v16 = vld [vmem:[%s2120_s1 + $0x388] sm:$0xff]  ;;  %236 = vmatpush.msra.mxu3 %v153_v12  ;;  %217 = vmatpush.msra.mxu2 %v85_v15  ;;  %v80_v21 = vld [vmem:[%s2120_s1 + $0x160] sm:$0xff]  ;;  %v159_v12 = vld [vmem:[%s2120_s1 + $0x3d8] sm:$0xff] }
   0x9   : > { %v81_v19 = vld [vmem:[%s2120_s1 + $0x168] sm:$0xff]  ;;  %v148_v22 = vld [vmem:[%s2120_s1 + $0x380] sm:$0xff]  ;;  %177 = vmatpush.msra.mxu0 %v84_v17  ;;  %196 = vmatpush.msra.mxu1 %v152_v18  ;;  %v91_v13 = vld [vmem:[%s2120_s1 + $0x1b8] sm:$0xff] }
   0xa   : > { %v145_v20 = vld [vmem:[%s2120_s1 + $0x368] sm:$0xff]  ;;  %237 = vmatpush.msra.mxu3 %v149_v16  ;;  %218 = vmatpush.msra.mxu2 %v81_v19  ;;  %v76_v25 = vld [vmem:[%s2120_s1 + $0x140] sm:$0xff]  ;;  %v94_v14 = vld [vmem:[%s2120_s1 + $0x1d0] sm:$0xff] }
   0xb   : > { %v77_v23 = vld [vmem:[%s2120_s1 + $0x148] sm:$0xff]  ;;  %v144_v26 = vld [vmem:[%s2120_s1 + $0x360] sm:$0xff]  ;;  %178 = vmatpush.msra.mxu0 %v80_v21  ;;  %197 = vmatpush.msra.mxu1 %v148_v22  ;;  %v162_v15 = vld [vmem:[%s2120_s1 + $0x3f0] sm:$0xff] }
   0xc   : > { %v141_v24 = vld [vmem:[%s2120_s1 + $0x348] sm:$0xff]  ;;  %238 = vmatpush.msra.mxu3 %v145_v20  ;;  %219 = vmatpush.msra.mxu2 %v77_v23  ;;  %v72_v29 = vld [vmem:[%s2120_s1 + $0x120] sm:$0xff]  ;;  %v155_v16 = vld [vmem:[%s2120_s1 + $0x3b8] sm:$0xff] }
   0xd   : > { %v73_v27 = vld [vmem:[%s2120_s1 + $0x128] sm:$0xff]  ;;  %v140_v30 = vld [vmem:[%s2120_s1 + $0x340] sm:$0xff]  ;;  %179 = vmatpush.msra.mxu0 %v76_v25  ;;  %198 = vmatpush.msra.mxu1 %v144_v26  ;;  %v87_v17 = vld [vmem:[%s2120_s1 + $0x198] sm:$0xff] }
   0xe   : > { %v137_v28 = vld [vmem:[%s2120_s1 + $0x328] sm:$0xff]  ;;  %239 = vmatpush.msra.mxu3 %v141_v24  ;;  %220 = vmatpush.msra.mxu2 %v73_v27  ;;  %v68_v33 = vld [vmem:[%s2120_s1 + $0x100] sm:$0xff]  ;;  %v90_v18 = vld [vmem:[%s2120_s1 + $0x1b0] sm:$0xff] }
   0xf   : > { %v69_v31 = vld [vmem:[%s2120_s1 + $0x108] sm:$0xff]  ;;  %v136_v34 = vld [vmem:[%s2120_s1 + $0x320] sm:$0xff]  ;;  %180 = vmatpush.msra.mxu0 %v72_v29  ;;  %199 = vmatpush.msra.mxu1 %v140_v30  ;;  %v158_v20 = vld [vmem:[%s2120_s1 + $0x3d0] sm:$0xff] }
  0x10   : > { %v133_v32 = vld [vmem:[%s2120_s1 + $0x308] sm:$0xff]  ;;  %240 = vmatpush.msra.mxu3 %v137_v28  ;;  %221 = vmatpush.msra.mxu2 %v69_v31  ;;  %v64_v37 = vld [vmem:[%s2120_s1 + $0xe0] sm:$0xff]  ;;  %v83_v21 = vld [vmem:[%s2120_s1 + $0x178] sm:$0xff] }
  0x11   : > { %v65_v35 = vld [vmem:[%s2120_s1 + $0xe8] sm:$0xff]  ;;  %v132_v38 = vld [vmem:[%s2120_s1 + $0x300] sm:$0xff]  ;;  %181 = vmatpush.msra.mxu0 %v68_v33  ;;  %200 = vmatpush.msra.mxu1 %v136_v34  ;;  %v151_v22 = vld [vmem:[%s2120_s1 + $0x398] sm:$0xff] }
  0x12   : > { %v129_v36 = vld [vmem:[%s2120_s1 + $0x2e8] sm:$0xff]  ;;  %241 = vmatpush.msra.mxu3 %v133_v32  ;;  %222 = vmatpush.msra.mxu2 %v65_v35  ;;  %v60_v41 = vld [vmem:[%s2120_s1 + $0xc0] sm:$0xff]  ;;  %v86_v23 = vld [vmem:[%s2120_s1 + $0x190] sm:$0xff] }
  0x13   : > { %v61_v39 = vld [vmem:[%s2120_s1 + $0xc8] sm:$0xff]  ;;  %v128_v42 = vld [vmem:[%s2120_s1 + $0x2e0] sm:$0xff]  ;;  %182 = vmatpush.msra.mxu0 %v64_v37  ;;  %201 = vmatpush.msra.mxu1 %v132_v38  ;;  %v154_v24 = vld [vmem:[%s2120_s1 + $0x3b0] sm:$0xff] }
  0x14   : > { %v125_v40 = vld [vmem:[%s2120_s1 + $0x2c8] sm:$0xff]  ;;  %242 = vmatpush.msra.mxu3 %v129_v36  ;;  %223 = vmatpush.msra.mxu2 %v61_v39  ;;  %v56_v45 = vld [vmem:[%s2120_s1 + $0xa0] sm:$0xff]  ;;  %v79_v25 = vld [vmem:[%s2120_s1 + $0x158] sm:$0xff] }
  0x15   : > { %v57_v43 = vld [vmem:[%s2120_s1 + $0xa8] sm:$0xff]  ;;  %v124_v46 = vld [vmem:[%s2120_s1 + $0x2c0] sm:$0xff]  ;;  %183 = vmatpush.msra.mxu0 %v60_v41  ;;  %202 = vmatpush.msra.mxu1 %v128_v42  ;;  %v147_v26 = vld [vmem:[%s2120_s1 + $0x378] sm:$0xff] }
  0x16   : > { %v121_v44 = vld [vmem:[%s2120_s1 + $0x2a8] sm:$0xff]  ;;  %243 = vmatpush.msra.mxu3 %v125_v40  ;;  %224 = vmatpush.msra.mxu2 %v57_v43  ;;  %v52_v49 = vld [vmem:[%s2120_s1 + $0x80] sm:$0xff]  ;;  %v82_v27 = vld [vmem:[%s2120_s1 + $0x170] sm:$0xff] }
  0x17   : > { %v53_v47 = vld [vmem:[%s2120_s1 + $0x88] sm:$0xff]  ;;  %v120_v50 = vld [vmem:[%s2120_s1 + $0x2a0] sm:$0xff]  ;;  %184 = vmatpush.msra.mxu0 %v56_v45  ;;  %203 = vmatpush.msra.mxu1 %v124_v46  ;;  %v150_v28 = vld [vmem:[%s2120_s1 + $0x390] sm:$0xff] }
  0x18   : > { %v117_v48 = vld [vmem:[%s2120_s1 + $0x288] sm:$0xff]  ;;  %244 = vmatpush.msra.mxu3 %v121_v44  ;;  %225 = vmatpush.msra.mxu2 %v53_v47  ;;  %v48_v53 = vld [vmem:[%s2120_s1 + $0x60] sm:$0xff]  ;;  %v75_v29 = vld [vmem:[%s2120_s1 + $0x138] sm:$0xff] }
  0x19   : > { %v49_v51 = vld [vmem:[%s2120_s1 + $0x68] sm:$0xff]  ;;  %v116_v54 = vld [vmem:[%s2120_s1 + $0x280] sm:$0xff]  ;;  %185 = vmatpush.msra.mxu0 %v52_v49  ;;  %204 = vmatpush.msra.mxu1 %v120_v50  ;;  %v143_v30 = vld [vmem:[%s2120_s1 + $0x358] sm:$0xff] }
  0x1a   : > { %v113_v52 = vld [vmem:[%s2120_s1 + $0x268] sm:$0xff]  ;;  %245 = vmatpush.msra.mxu3 %v117_v48  ;;  %226 = vmatpush.msra.mxu2 %v49_v51  ;;  %v44_v57 = vld [vmem:[%s2120_s1 + $0x40] sm:$0xff]  ;;  %v78_v31 = vld [vmem:[%s2120_s1 + $0x150] sm:$0xff] }
  0x1b   : > { %v45_v55 = vld [vmem:[%s2120_s1 + $0x48] sm:$0xff]  ;;  %v112_v58 = vld [vmem:[%s2120_s1 + $0x260] sm:$0xff]  ;;  %186 = vmatpush.msra.mxu0 %v48_v53  ;;  %205 = vmatpush.msra.mxu1 %v116_v54  ;;  %v146_v32 = vld [vmem:[%s2120_s1 + $0x370] sm:$0xff] }
  0x1c   : > { %v109_v56 = vld [vmem:[%s2120_s1 + $0x248] sm:$0xff]  ;;  %246 = vmatpush.msra.mxu3 %v113_v52  ;;  %227 = vmatpush.msra.mxu2 %v45_v55  ;;  %v40_v61 = vld [vmem:[%s2120_s1 + $0x20] sm:$0xff]  ;;  %v71_v33 = vld [vmem:[%s2120_s1 + $0x118] sm:$0xff] }
  0x1d   : > { %v41_v59 = vld [vmem:[%s2120_s1 + $0x28] sm:$0xff]  ;;  %v108_v62 = vld [vmem:[%s2120_s1 + $0x240] sm:$0xff]  ;;  %187 = vmatpush.msra.mxu0 %v44_v57  ;;  %206 = vmatpush.msra.mxu1 %v112_v58  ;;  %v139_v34 = vld [vmem:[%s2120_s1 + $0x338] sm:$0xff] }
  0x1e   : > { %v105_v60 = vld [vmem:[%s2120_s1 + $0x228] sm:$0xff]  ;;  %247 = vmatpush.msra.mxu3 %v109_v56  ;;  %228 = vmatpush.msra.mxu2 %v41_v59  ;;  %v36_v6 = vld [vmem:[%s2120_s1] sm:$0xff]  ;;  %v74_v35 = vld [vmem:[%s2120_s1 + $0x130] sm:$0xff] }
  0x1f   : > { %v37_v63 = vld [vmem:[%s2120_s1 + $0x8] sm:$0xff]  ;;  %188 = vmatpush.msra.mxu0 %v40_v61  ;;  %207 = vmatpush.msra.mxu1 %v108_v62  ;;  %v104_v7 = vld [vmem:[%s2120_s1 + $0x220] sm:$0xff]  ;;  %v142_v36 = vld [vmem:[%s2120_s1 + $0x350] sm:$0xff] }
  0x20   : > { %v101_v4 = vld [vmem:[%s2120_s1 + $0x208] sm:$0xff]  ;;  %248 = vmatpush.msra.mxu3 %v105_v60  ;;  %229 = vmatpush.msra.mxu2 %v37_v63  ;;  %v100_v11 = vld [vmem:[%s2120_s1 + $0x200] sm:$0xff]  ;;  %v67_v37 = vld [vmem:[%s2120_s1 + $0xf8] sm:$0xff] }
  0x21   : > { %189 = vmatpush.msra.mxu0 %v36_v6  ;;  %208 = vmatpush.msra.mxu1 %v104_v7  ;;  %v1406_v19 = vld [vmem:[%s34_s15] sm:$0xff]  ;;  %v135_v38 = vld [vmem:[%s2120_s1 + $0x318] sm:$0xff]  ;;  %v70_v39 = vld [vmem:[%s2120_s1 + $0x110] sm:$0xff] }
  0x22   : > { %249 = vmatpush.msra.mxu3 %v101_v4  ;;  %294 = vmatpush.msrb.mxu2 %v99_v5  ;;  %v138_v40 = vld [vmem:[%s2120_s1 + $0x330] sm:$0xff]  ;;  %v63_v41 = vld [vmem:[%s2120_s1 + $0xd8] sm:$0xff] }
  0x23   : > { %254 = vmatpush.msrb.mxu0 %v98_v10  ;;  %209 = vmatpush.msra.mxu1 %v100_v11  ;;  %v131_v42 = vld [vmem:[%s2120_s1 + $0x2f8] sm:$0xff]  ;;  %v66_v43 = vld [vmem:[%s2120_s1 + $0xf0] sm:$0xff] }
  0x24   : > { %314 = vmatpush.msrb.mxu3 %v163_v8  ;;  %295 = vmatpush.msrb.mxu2 %v95_v9  ;;  %v134_v44 = vld [vmem:[%s2120_s1 + $0x310] sm:$0xff]  ;;  %v59_v45 = vld [vmem:[%s2120_s1 + $0xb8] sm:$0xff] }
  0x25   : > { %255 = vmatpush.msrb.mxu0 %v94_v14  ;;  %274 = vmatpush.msrb.mxu1 %v162_v15  ;;  %v127_v46 = vld [vmem:[%s2120_s1 + $0x2d8] sm:$0xff]  ;;  %v62_v47 = vld [vmem:[%s2120_s1 + $0xd0] sm:$0xff]  ;;  %v925_v14 = vld [vmem:[%s2120_s1 + $0x5e8] sm:$0xff] }
  0x26   : > { %315 = vmatpush.msrb.mxu3 %v159_v12  ;;  %296 = vmatpush.msrb.mxu2 %v91_v13  ;;  %v130_v48 = vld [vmem:[%s2120_s1 + $0x2f0] sm:$0xff]  ;;  %v55_v49 = vld [vmem:[%s2120_s1 + $0x98] sm:$0xff]  ;;  %v924_v13 = vld [vmem:[%s2120_s1 + $0x5e0] sm:$0xff] }
  0x27   : > { %256 = vmatpush.msrb.mxu0 %v90_v18  ;;  %230 = vmatmul.f32.vlgmr.msra.gmra.mxu2 %v1406_v19  ;;  %v123_v50 = vld [vmem:[%s2120_s1 + $0x2b8] sm:$0xff]  ;;  %v58_v51 = vld [vmem:[%s2120_s1 + $0xb0] sm:$0xff]  ;;  %v920_v15 = vld [vmem:[%s2120_s1 + $0x5c0] sm:$0xff] }
  0x28   : > { %316 = vmatpush.msrb.mxu3 %v155_v16  ;;  %297 = vmatpush.msrb.mxu2 %v87_v17  ;;  %v126_v52 = vld [vmem:[%s2120_s1 + $0x2d0] sm:$0xff]  ;;  %v51_v53 = vld [vmem:[%s2120_s1 + $0x78] sm:$0xff]  ;;  %v988_v16 = vld [vmem:[%s2120_s1 + $0x7e0] sm:$0xff] }
  0x29   : > { %275 = vmatpush.msrb.mxu1 %v158_v20  ;;  %250 = vmatmul.f32.vlgmr.msra.gmra.mxu3 %v1106_v3  ;;  %v119_v54 = vld [vmem:[%s2120_s1 + $0x298] sm:$0xff]  ;;  %v54_v55 = vld [vmem:[%s2120_s1 + $0x90] sm:$0xff]  ;;  %v989_v17 = vld [vmem:[%s2120_s1 + $0x7e8] sm:$0xff] }
  0x2a   : > { %298 = vmatpush.msrb.mxu2 %v83_v21  ;;  %317 = vmatpush.msrb.mxu3 %v151_v22  ;;  %v122_v56 = vld [vmem:[%s2120_s1 + $0x2b0] sm:$0xff]  ;;  %v47_v57 = vld [vmem:[%s2120_s1 + $0x58] sm:$0xff]  ;;  %v916_v18 = vld [vmem:[%s2120_s1 + $0x5a0] sm:$0xff] }
  0x2b   : > { %257 = vmatpush.msrb.mxu0 %v86_v23  ;;  %276 = vmatpush.msrb.mxu1 %v154_v24  ;;  %v115_v58 = vld [vmem:[%s2120_s1 + $0x278] sm:$0xff]  ;;  %v50_v59 = vld [vmem:[%s2120_s1 + $0x70] sm:$0xff]  ;;  %v917_v20 = vld [vmem:[%s2120_s1 + $0x5a8] sm:$0xff] }
  0x2c   : > { %299 = vmatpush.msrb.mxu2 %v79_v25  ;;  %318 = vmatpush.msrb.mxu3 %v147_v26  ;;  %v118_v60 = vld [vmem:[%s2120_s1 + $0x290] sm:$0xff]  ;;  %v43_v61 = vld [vmem:[%s2120_s1 + $0x38] sm:$0xff]  ;;  %v985_v21 = vld [vmem:[%s2120_s1 + $0x7c8] sm:$0xff] }
  0x2d   : > { %258 = vmatpush.msrb.mxu0 %v82_v27  ;;  %277 = vmatpush.msrb.mxu1 %v150_v28  ;;  %v111_v62 = vld [vmem:[%s2120_s1 + $0x258] sm:$0xff]  ;;  %v46_v63 = vld [vmem:[%s2120_s1 + $0x50] sm:$0xff]  ;;  %v912_v22 = vld [vmem:[%s2120_s1 + $0x580] sm:$0xff] }
  0x2e   : > { %300 = vmatpush.msrb.mxu2 %v75_v29  ;;  %319 = vmatpush.msrb.mxu3 %v143_v30  ;;  %v114_v4 = vld [vmem:[%s2120_s1 + $0x270] sm:$0xff]  ;;  %v39_v5 = vld [vmem:[%s2120_s1 + $0x18] sm:$0xff]  ;;  %v980_v23 = vld [vmem:[%s2120_s1 + $0x7a0] sm:$0xff] }
  0x2f   : > { %190 = vmatmul.f32.vlgmr.msra.gmra.mxu0 %v1406_v19  ;;  %278 = vmatpush.msrb.mxu1 %v146_v32  ;;  %v107_v6 = vld [vmem:[%s2120_s1 + $0x238] sm:$0xff]  ;;  %v42_v7 = vld [vmem:[%s2120_s1 + $0x30] sm:$0xff]  ;;  %v913_v24 = vld [vmem:[%s2120_s1 + $0x588] sm:$0xff] }
  0x30   : > { %259 = vmatpush.msrb.mxu0 %v78_v31  ;;  %301 = vmatpush.msrb.mxu2 %v71_v33  ;;  %v110_v8 = vld [vmem:[%s2120_s1 + $0x250] sm:$0xff]  ;;  %v103_v9 = vld [vmem:[%s2120_s1 + $0x218] sm:$0xff]  ;;  %v981_v25 = vld [vmem:[%s2120_s1 + $0x7a8] sm:$0xff] }
  0x31   : > { %320 = vmatpush.msrb.mxu3 %v139_v34  ;;  %210 = vmatmul.f32.vlgmr.msra.gmra.mxu1 %v1106_v3  ;;  %v38_v10 = vld [vmem:[%s2120_s1 + $0x10] sm:$0xff]  ;;  %v908_v26 = vld [vmem:[%s2120_s1 + $0x560] sm:$0xff]  ;;  %v909_v28 = vld [vmem:[%s2120_s1 + $0x568] sm:$0xff] }
  0x32   : > { %260 = vmatpush.msrb.mxu0 %v74_v35  ;;  %279 = vmatpush.msrb.mxu1 %v142_v36  ;;  %v106_v11 = vld [vmem:[%s2120_s1 + $0x230] sm:$0xff]  ;;  %v976_v27 = vld [vmem:[%s2120_s1 + $0x780] sm:$0xff]  ;;  %v977_v29 = vld [vmem:[%s2120_s1 + $0x788] sm:$0xff] }
  0x33   : > { %302 = vmatpush.msrb.mxu2 %v67_v37  ;;  %321 = vmatpush.msrb.mxu3 %v135_v38  ;;  %v102_v12 = vld [vmem:[%s2120_s1 + $0x210] sm:$0xff]  ;;  %v904_v30 = vld [vmem:[%s2120_s1 + $0x540] sm:$0xff]  ;;  %v905_v32 = vld [vmem:[%s2120_s1 + $0x548] sm:$0xff] }
  0x34   : > { %261 = vmatpush.msrb.mxu0 %v70_v39  ;;  %280 = vmatpush.msrb.mxu1 %v138_v40  ;;  %v972_v31 = vld [vmem:[%s2120_s1 + $0x760] sm:$0xff]  ;;  %v973_v33 = vld [vmem:[%s2120_s1 + $0x768] sm:$0xff] }
  0x35   : > { %303 = vmatpush.msrb.mxu2 %v63_v41  ;;  %322 = vmatpush.msrb.mxu3 %v131_v42  ;;  %v900_v34 = vld [vmem:[%s2120_s1 + $0x520] sm:$0xff]  ;;  %v901_v36 = vld [vmem:[%s2120_s1 + $0x528] sm:$0xff] }
  0x36   : > { %262 = vmatpush.msrb.mxu0 %v66_v43  ;;  %281 = vmatpush.msrb.mxu1 %v134_v44  ;;  %v968_v35 = vld [vmem:[%s2120_s1 + $0x740] sm:$0xff]  ;;  %v969_v37 = vld [vmem:[%s2120_s1 + $0x748] sm:$0xff] }
  0x37   : > { %304 = vmatpush.msrb.mxu2 %v59_v45  ;;  %323 = vmatpush.msrb.mxu3 %v127_v46  ;;  %v896_v38 = vld [vmem:[%s2120_s1 + $0x500] sm:$0xff]  ;;  %v897_v40 = vld [vmem:[%s2120_s1 + $0x508] sm:$0xff] }
  0x38   : > { %263 = vmatpush.msrb.mxu0 %v62_v47  ;;  %282 = vmatpush.msrb.mxu1 %v130_v48  ;;  %v964_v39 = vld [vmem:[%s2120_s1 + $0x720] sm:$0xff]  ;;  %v965_v41 = vld [vmem:[%s2120_s1 + $0x728] sm:$0xff] }
  0x39   : > { %305 = vmatpush.msrb.mxu2 %v55_v49  ;;  %324 = vmatpush.msrb.mxu3 %v123_v50  ;;  %v892_v42 = vld [vmem:[%s2120_s1 + $0x4e0] sm:$0xff]  ;;  %v893_v44 = vld [vmem:[%s2120_s1 + $0x4e8] sm:$0xff] }
  0x3a   : > { %264 = vmatpush.msrb.mxu0 %v58_v51  ;;  %283 = vmatpush.msrb.mxu1 %v126_v52  ;;  %v960_v43 = vld [vmem:[%s2120_s1 + $0x700] sm:$0xff]  ;;  %v961_v45 = vld [vmem:[%s2120_s1 + $0x708] sm:$0xff] }
  0x3b   : > { %306 = vmatpush.msrb.mxu2 %v51_v53  ;;  %325 = vmatpush.msrb.mxu3 %v119_v54  ;;  %v888_v46 = vld [vmem:[%s2120_s1 + $0x4c0] sm:$0xff]  ;;  %v889_v48 = vld [vmem:[%s2120_s1 + $0x4c8] sm:$0xff] }
  0x3c   : > { %265 = vmatpush.msrb.mxu0 %v54_v55  ;;  %284 = vmatpush.msrb.mxu1 %v122_v56  ;;  %v956_v47 = vld [vmem:[%s2120_s1 + $0x6e0] sm:$0xff]  ;;  %v957_v50 = vld [vmem:[%s2120_s1 + $0x6e8] sm:$0xff] }
  0x3d   : > { %307 = vmatpush.msrb.mxu2 %v47_v57  ;;  %326 = vmatpush.msrb.mxu3 %v115_v58  ;;  %v1689_v49 = vld [vmem:[%s2121_s2] sm:$0xf]  ;;  %v885_v53 = vld [vmem:[%s2120_s1 + $0x4a8] sm:$0xff] }
  0x3e   : > { %266 = vmatpush.msrb.mxu0 %v50_v59  ;;  %285 = vmatpush.msrb.mxu1 %v118_v60  ;;  %v884_v51 = vld [vmem:[%s2120_s1 + $0x4a0] sm:$0xff]  ;;  %v953_v54 = vld [vmem:[%s2120_s1 + $0x6c8] sm:$0xff]  ;;  %v166_v58 = vperm.slane %v1689_v49, 0  ;;  %v167_v59 = vperm.slane %v1689_v49, 1 }
  0x3f   : > { %308 = vmatpush.msrb.mxu2 %v43_v61  ;;  %327 = vmatpush.msrb.mxu3 %v111_v62  ;;  %v952_v52 = vld [vmem:[%s2120_s1 + $0x6c0] sm:$0xff]  ;;  %v881_v57 = vld [vmem:[%s2120_s1 + $0x488] sm:$0xff] }
  0x40   : > { %267 = vmatpush.msrb.mxu0 %v46_v63  ;;  %286 = vmatpush.msrb.mxu1 %v114_v4  ;;  %v880_v55 = vld [vmem:[%s2120_s1 + $0x480] sm:$0xff]  ;;  %v949_v60 = vld [vmem:[%s2120_s1 + $0x6a8] sm:$0xff] }
  0x41   : > { %309 = vmatpush.msrb.mxu2 %v39_v5  ;;  %328 = vmatpush.msrb.mxu3 %v107_v6  ;;  %v948_v56 = vld [vmem:[%s2120_s1 + $0x6a0] sm:$0xff]  ;;  %v877_v63 = vld [vmem:[%s2120_s1 + $0x468] sm:$0xff] }
  0x42   : > { %268 = vmatpush.msrb.mxu0 %v42_v7  ;;  %287 = vmatpush.msrb.mxu1 %v110_v8  ;;  %v876_v61 = vld [vmem:[%s2120_s1 + $0x460] sm:$0xff]  ;;  %v945_v4 = vld [vmem:[%s2120_s1 + $0x688] sm:$0xff] }
  0x43   : > { %310 = vmatmul.f32.vlgmr.msrb.gmra.mxu2 %v1406_v19  ;;  %329 = vmatpush.msrb.mxu3 %v103_v9  ;;  %v944_v62 = vld [vmem:[%s2120_s1 + $0x680] sm:$0xff]  ;;  %v873_v9 = vld [vmem:[%s2120_s1 + $0x448] sm:$0xff] }
  0x44   : > { %269 = vmatpush.msrb.mxu0 %v38_v10  ;;  %288 = vmatpush.msrb.mxu1 %v106_v11  ;;  %v872_v7 = vld [vmem:[%s2120_s1 + $0x440] sm:$0xff] }
  0x45   : > { %330 = vmatmul.f32.vlgmr.msrb.gmra.mxu3 %v1106_v3  ;;  %270 = vmatmul.f32.vlgmr.msrb.gmra.mxu0 %v1406_v19  ;;  %v984_v19 = vld [vmem:[%s2120_s1 + $0x7c0] sm:$0xff] }
  0x46   : > { %289 = vmatpush.msrb.mxu1 %v102_v12  ;;  %537 = vmatpush.msra.mxu0 %v924_v13  ;;  %v940_v8 = vld [vmem:[%s2120_s1 + $0x660] sm:$0xff]  ;;  %v941_v12 = vld [vmem:[%s2120_s1 + $0x668] sm:$0xff] }
  0x47   : > { %290 = vmatmul.f32.vlgmr.msrb.gmra.mxu1 %v1106_v3  ;;  %577 = vmatpush.msra.mxu2 %v925_v14  ;;  %v921_v3 = vld [vmem:[%s2120_s1 + $0x5c8] sm:$0xff]  ;;  %v868_v14 = vld [vmem:[%s2120_s1 + $0x420] sm:$0xff] }
  0x48   : > { %538 = vmatpush.msra.mxu0 %v920_v15  ;;  %557 = vmatpush.msra.mxu1 %v988_v16  ;;  %v936_v15 = vld [vmem:[%s2120_s1 + $0x640] sm:$0xff]  ;;  %v869_v16 = vld [vmem:[%s2120_s1 + $0x428] sm:$0xff] }
  0x49   : > { %578 = vmatpush.msra.mxu2 %v921_v3  ;;  %597 = vmatpush.msra.mxu3 %v989_v17 }
  0x4a   : > { %539 = vmatpush.msra.mxu0 %v916_v18  ;;  %558 = vmatpush.msra.mxu1 %v984_v19  ;;  %v937_v18 = vld [vmem:[%s2120_s1 + $0x648] sm:$0xff] }
  0x4b   : > { %579 = vmatpush.msra.mxu2 %v917_v20  ;;  %598 = vmatpush.msra.mxu3 %v985_v21  ;;  %v864_v20 = vld [vmem:[%s2120_s1 + $0x400] sm:$0xff] }
  0x4c   : > { %540 = vmatpush.msra.mxu0 %v912_v22  ;;  %559 = vmatpush.msra.mxu1 %v980_v23  ;;  %v932_v21 = vld [vmem:[%s2120_s1 + $0x620] sm:$0xff]  ;;  %v865_v22 = vld [vmem:[%s2120_s1 + $0x408] sm:$0xff] }
  0x4d   : > { %580 = vmatpush.msra.mxu2 %v913_v24  ;;  %599 = vmatpush.msra.mxu3 %v981_v25  ;;  %v933_v24 = vld [vmem:[%s2120_s1 + $0x628] sm:$0xff]  ;;  %v926_v25 = vld [vmem:[%s2120_s1 + $0x5f0] sm:$0xff] }
  0x4e   : > { %541 = vmatpush.msra.mxu0 %v908_v26  ;;  %560 = vmatpush.msra.mxu1 %v976_v27  ;;  %v927_v26 = vld [vmem:[%s2120_s1 + $0x5f8] sm:$0xff] }
  0x4f   : > { %581 = vmatpush.msra.mxu2 %v909_v28  ;;  %600 = vmatpush.msra.mxu3 %v977_v29  ;;  %v928_v28 = vld [vmem:[%s2120_s1 + $0x600] sm:$0xff]  ;;  %v929_v29 = vld [vmem:[%s2120_s1 + $0x608] sm:$0xff] }
  0x50   : > { %542 = vmatpush.msra.mxu0 %v904_v30  ;;  %561 = vmatpush.msra.mxu1 %v972_v31  ;;  %v922_v30 = vld [vmem:[%s2120_s1 + $0x5d0] sm:$0xff] }
  0x51   : > { %582 = vmatpush.msra.mxu2 %v905_v32  ;;  %601 = vmatpush.msra.mxu3 %v973_v33  ;;  %v990_v31 = vld [vmem:[%s2120_s1 + $0x7f0] sm:$0xff]  ;;  %v923_v32 = vld [vmem:[%s2120_s1 + $0x5d8] sm:$0xff] }
  0x52   : > { %543 = vmatpush.msra.mxu0 %v900_v34  ;;  %562 = vmatpush.msra.mxu1 %v968_v35  ;;  %v991_v33 = vld [vmem:[%s2120_s1 + $0x7f8] sm:$0xff]  ;;  %v918_v34 = vld [vmem:[%s2120_s1 + $0x5b0] sm:$0xff] }
  0x53   : > { %583 = vmatpush.msra.mxu2 %v901_v36  ;;  %602 = vmatpush.msra.mxu3 %v969_v37  ;;  %v986_v35 = vld [vmem:[%s2120_s1 + $0x7d0] sm:$0xff]  ;;  %v919_v36 = vld [vmem:[%s2120_s1 + $0x5b8] sm:$0xff] }
  0x54   : > { %544 = vmatpush.msra.mxu0 %v896_v38  ;;  %563 = vmatpush.msra.mxu1 %v964_v39  ;;  %v987_v37 = vld [vmem:[%s2120_s1 + $0x7d8] sm:$0xff]  ;;  %v914_v38 = vld [vmem:[%s2120_s1 + $0x590] sm:$0xff] }
  0x55   : > { %584 = vmatpush.msra.mxu2 %v897_v40  ;;  %603 = vmatpush.msra.mxu3 %v965_v41  ;;  %v982_v39 = vld [vmem:[%s2120_s1 + $0x7b0] sm:$0xff]  ;;  %v915_v40 = vld [vmem:[%s2120_s1 + $0x598] sm:$0xff] }
  0x56   : > { %545 = vmatpush.msra.mxu0 %v892_v42  ;;  %564 = vmatpush.msra.mxu1 %v960_v43  ;;  %v983_v41 = vld [vmem:[%s2120_s1 + $0x7b8] sm:$0xff]  ;;  %v910_v43 = vld [vmem:[%s2120_s1 + $0x570] sm:$0xff] }
  0x57   : > { %585 = vmatpush.msra.mxu2 %v893_v44  ;;  %604 = vmatpush.msra.mxu3 %v961_v45  ;;  %v978_v44 = vld [vmem:[%s2120_s1 + $0x790] sm:$0xff]  ;;  %v911_v45 = vld [vmem:[%s2120_s1 + $0x578] sm:$0xff] }
  0x58   : > { %546 = vmatpush.msra.mxu0 %v888_v46  ;;  %565 = vmatpush.msra.mxu1 %v956_v47 }
  0x59   : > { %586 = vmatpush.msra.mxu2 %v889_v48  ;;  %605 = vmatpush.msra.mxu3 %v957_v50  ;;  %v979_v48 = vld [vmem:[%s2120_s1 + $0x798] sm:$0xff] }
  0x5a   : > { %547 = vmatpush.msra.mxu0 %v884_v51  ;;  %566 = vmatpush.msra.mxu1 %v952_v52  ;;  %v906_v51 = vld [vmem:[%s2120_s1 + $0x550] sm:$0xff] }
  0x5b   : > { %587 = vmatpush.msra.mxu2 %v885_v53  ;;  %606 = vmatpush.msra.mxu3 %v953_v54  ;;  %v974_v52 = vld [vmem:[%s2120_s1 + $0x770] sm:$0xff]  ;;  %v907_v53 = vld [vmem:[%s2120_s1 + $0x558] sm:$0xff] }
  0x5c   : > { %548 = vmatpush.msra.mxu0 %v880_v55  ;;  %567 = vmatpush.msra.mxu1 %v948_v56  ;;  %v975_v54 = vld [vmem:[%s2120_s1 + $0x778] sm:$0xff]  ;;  %v902_v55 = vld [vmem:[%s2120_s1 + $0x530] sm:$0xff] }
  0x5d   : > { %588 = vmatpush.msra.mxu2 %v881_v57  ;;  %607 = vmatpush.msra.mxu3 %v949_v60  ;;  %v970_v56 = vld [vmem:[%s2120_s1 + $0x750] sm:$0xff]  ;;  %v903_v57 = vld [vmem:[%s2120_s1 + $0x538] sm:$0xff] }
  0x5e   : > { %549 = vmatpush.msra.mxu0 %v876_v61  ;;  %568 = vmatpush.msra.mxu1 %v944_v62  ;;  %v966_v60 = vld [vmem:[%s2120_s1 + $0x730] sm:$0xff]  ;;  %v899_v61 = vld [vmem:[%s2120_s1 + $0x518] sm:$0xff] }
  0x5f   : > { %589 = vmatpush.msra.mxu2 %v877_v63  ;;  %608 = vmatpush.msra.mxu3 %v945_v4  ;;  %v967_v62 = vld [vmem:[%s2120_s1 + $0x738] sm:$0xff]  ;;  %v894_v63 = vld [vmem:[%s2120_s1 + $0x4f0] sm:$0xff] }
  0x60   : > { %550 = vmatpush.msra.mxu0 %v872_v7  ;;  %569 = vmatpush.msra.mxu1 %v940_v8  ;;  %v962_v4 = vld [vmem:[%s2120_s1 + $0x710] sm:$0xff] }
  0x61   : > { %590 = vmatpush.msra.mxu2 %v873_v9  ;;  %609 = vmatpush.msra.mxu3 %v941_v12  ;;  %v890_v8 = vld [vmem:[%s2120_s1 + $0x4d0] sm:$0xff]  ;;  %v168_v12 = vperm.slane %v1689_v49, 2 }
  0x62   : > { %551 = vmatpush.msra.mxu0 %v868_v14  ;;  %570 = vmatpush.msra.mxu1 %v936_v15  ;;  %v958_v9 = vld [vmem:[%s2120_s1 + $0x6f0] sm:$0xff]  ;;  %v891_v14 = vld [vmem:[%s2120_s1 + $0x4d8] sm:$0xff] }
  0x63   : > { %591 = vmatpush.msra.mxu2 %v869_v16  ;;  %610 = vmatpush.msra.mxu3 %v937_v18  ;;  %v959_v15 = vld [vmem:[%s2120_s1 + $0x6f8] sm:$0xff] }
  0x64   : > { %552 = vmatpush.msra.mxu0 %v864_v20  ;;  %571 = vmatpush.msra.mxu1 %v932_v21  ;;  %v887_v18 = vld [vmem:[%s2120_s1 + $0x4b8] sm:$0xff] }
  0x65   : > { %592 = vmatpush.msra.mxu2 %v865_v22  ;;  %611 = vmatpush.msra.mxu3 %v933_v24  ;;  %v950_v24 = vld [vmem:[%s2120_s1 + $0x6b0] sm:$0xff] }
  0x66   : > { %617 = vmatpush.msrb.mxu0 %v926_v25  ;;  %572 = vmatpush.msra.mxu1 %v928_v28  ;;  %v951_v28 = vld [vmem:[%s2120_s1 + $0x6b8] sm:$0xff] }
  0x67   : > { %657 = vmatpush.msrb.mxu2 %v927_v26  ;;  %612 = vmatpush.msra.mxu3 %v929_v29 }
  0x68   : > { %618 = vmatpush.msrb.mxu0 %v922_v30  ;;  %637 = vmatpush.msrb.mxu1 %v990_v31 }
  0x69   : > { %658 = vmatpush.msrb.mxu2 %v923_v32  ;;  %677 = vmatpush.msrb.mxu3 %v991_v33  ;;  %v878_v32 = vld [vmem:[%s2120_s1 + $0x470] sm:$0xff] }
  0x6a   : > { %619 = vmatpush.msrb.mxu0 %v918_v34  ;;  %638 = vmatpush.msrb.mxu1 %v986_v35  ;;  %v946_v33 = vld [vmem:[%s2120_s1 + $0x690] sm:$0xff]  ;;  %v879_v34 = vld [vmem:[%s2120_s1 + $0x478] sm:$0xff] }
  0x6b   : > { %659 = vmatpush.msrb.mxu2 %v919_v36  ;;  %678 = vmatpush.msrb.mxu3 %v987_v37  ;;  %v947_v37 = vld [vmem:[%s2120_s1 + $0x698] sm:$0xff] }
  0x6c   : > { %620 = vmatpush.msrb.mxu0 %v914_v38  ;;  %639 = vmatpush.msrb.mxu1 %v982_v39 }
  0x6d   : > { %660 = vmatpush.msrb.mxu2 %v915_v40  ;;  %679 = vmatpush.msrb.mxu3 %v983_v41  ;;  %v874_v40 = vld [vmem:[%s2120_s1 + $0x450] sm:$0xff] }
  0x6e   : > { %621 = vmatpush.msrb.mxu0 %v910_v43  ;;  %640 = vmatpush.msrb.mxu1 %v978_v44  ;;  %v942_v41 = vld [vmem:[%s2120_s1 + $0x670] sm:$0xff]  ;;  %v943_v43 = vld [vmem:[%s2120_s1 + $0x678] sm:$0xff] }
  0x6f   : > { %661 = vmatpush.msrb.mxu2 %v911_v45  ;;  %680 = vmatpush.msrb.mxu3 %v979_v48  ;;  %v938_v48 = vld [vmem:[%s2120_s1 + $0x650] sm:$0xff] }
  0x70   : > { %622 = vmatpush.msrb.mxu0 %v906_v51  ;;  %641 = vmatpush.msrb.mxu1 %v974_v52 }
  0x71   : > { %662 = vmatpush.msrb.mxu2 %v907_v53  ;;  %681 = vmatpush.msrb.mxu3 %v975_v54 }
  0x72   : > { %623 = vmatpush.msrb.mxu0 %v902_v55  ;;  %642 = vmatpush.msrb.mxu1 %v970_v56  ;;  %v871_v56 = vld [vmem:[%s2120_s1 + $0x438] sm:$0xff] }
  0x73   : > { %663 = vmatpush.msrb.mxu2 %v903_v57  ;;  %573 = vmatmul.f32.vlgmr.msra.gmra.mxu1 %v1102_v2  ;;  %v939_v57 = vld [vmem:[%s2120_s1 + $0x658] sm:$0xff] }
  0x74   : > { %643 = vmatpush.msrb.mxu1 %v966_v60  ;;  %613 = vmatmul.f32.vlgmr.msra.gmra.mxu3 %v1102_v2  ;;  %v935_v60 = vld [vmem:[%s2120_s1 + $0x638] sm:$0xff] }
  0x75   : > { %664 = vmatpush.msrb.mxu2 %v899_v61 }
  0x76   : > { %644 = vmatpush.msrb.mxu1 %v962_v4 }
  0x78   : > { %645 = vmatpush.msrb.mxu1 %v958_v9 }
  0xaa   : > { %v231_v6 = vpop.f32.mrf.mxu2 }
  0xab   : > { %v232_v11 = vadd.f32 %v231_v6, %v167_v59  ;;  %v898_v59 = vld [vmem:[%s2120_s1 + $0x510] sm:$0xff]  ;;  %v963_v6 = vld [vmem:[%s2120_s1 + $0x718] sm:$0xff] }
  0xac   : > { %v191_v5 = vpop.f32.mrf.mxu0  ;;  %v251_v13 = vpop.f32.mrf.mxu3  ;;  %624 = vmatpush.msrb.mxu0 %v898_v59  ;;  %v934_v59 = vld [vmem:[%s2120_s1 + $0x630] sm:$0xff] }
  0xad   : > { %v192_v10 = vadd.f32 %v191_v5, %v166_v58  ;;  %v252_v17 = vadd.f32 %v251_v13, %v232_v11  ;;  %v971_v58 = vld [vmem:[%s2120_s1 + $0x758] sm:$0xff]  ;;  %v169_v13 = vperm.slane %v1689_v49, 3  ;;  %v886_v49 = vld [vmem:[%s2120_s1 + $0x4b0] sm:$0xff] }
  0xae   : > { %v211_v3 = vpop.f32.mrf.mxu1  ;;  %682 = vmatpush.msrb.mxu3 %v971_v58  ;;  %v895_v5 = vld [vmem:[%s2120_s1 + $0x4f8] sm:$0xff]  ;;  %625 = vmatpush.msrb.mxu0 %v894_v63  ;;  %v930_v63 = vld [vmem:[%s2120_s1 + $0x610] sm:$0xff] }
  0xaf   : > { %v212_v19 = vadd.f32 %v211_v3, %v192_v10  ;;  %v862_v23 = vmul.f32 -1.442695, %v252_v17  ;;  %665 = vmatpush.msrb.mxu2 %v895_v5  ;;  %v954_v17 = vld [vmem:[%s2120_s1 + $0x6d0] sm:$0xff] }
  0xb0   : > { %683 = vmatpush.msrb.mxu3 %v967_v62  ;;  %626 = vmatpush.msrb.mxu0 %v890_v8 }
  0xb1   : > { %v861_v27 = vmul.f32 -1.442695, %v212_v19  ;;  %1039 = vpow2.f32 %v862_v23  ;;  %v955_v19 = vld [vmem:[%s2120_s1 + $0x6d8] sm:$0xff]  ;;  %666 = vmatpush.msrb.mxu2 %v891_v14  ;;  %v882_v23 = vld [vmem:[%s2120_s1 + $0x490] sm:$0xff]  ;;  %646 = vmatpush.msrb.mxu1 %v954_v17 }
  0xb2   : > { %684 = vmatpush.msrb.mxu3 %v963_v6  ;;  %627 = vmatpush.msrb.mxu0 %v886_v49  ;;  %v931_v6 = vld [vmem:[%s2120_s1 + $0x618] sm:$0xff] }
  0xb3   : > { %1041 = vpow2.f32 %v861_v27  ;;  %v883_v27 = vld [vmem:[%s2120_s1 + $0x498] sm:$0xff]  ;;  %667 = vmatpush.msrb.mxu2 %v887_v18  ;;  %647 = vmatpush.msrb.mxu1 %v950_v24 }
  0xb4   : > { %685 = vmatpush.msrb.mxu3 %v959_v15  ;;  %628 = vmatpush.msrb.mxu0 %v882_v23 }
  0xb5   : > { %668 = vmatpush.msrb.mxu2 %v883_v27  ;;  %648 = vmatpush.msrb.mxu1 %v946_v33 }
  0xb6   : > { %686 = vmatpush.msrb.mxu3 %v955_v19  ;;  %629 = vmatpush.msrb.mxu0 %v878_v32 }
  0xb7   : > { %v1040_v42 = vpop.eup %1039  ;;  %669 = vmatpush.msrb.mxu2 %v879_v34  ;;  %649 = vmatpush.msrb.mxu1 %v942_v41 }
  0xb8   : > { %v1825_v47 = vadd.f32 1.0, %v1040_v42  ;;  %687 = vmatpush.msrb.mxu3 %v951_v28  ;;  %v875_v42 = vld [vmem:[%s2120_s1 + $0x458] sm:$0xff]  ;;  %630 = vmatpush.msrb.mxu0 %v874_v40 }
  0xb9   : > { %v1042_v46 = vpop.eup %1041  ;;  %670 = vmatpush.msrb.mxu2 %v875_v42  ;;  %650 = vmatpush.msrb.mxu1 %v938_v48 }
  0xba   : > { %v1830_v50 = vadd.f32 1.0, %v1042_v46  ;;  %1043 = vrcp.f32 %v1825_v47  ;;  %vm362_vm0 = vweird.f32 %v1825_v47  ;;  %688 = vmatpush.msrb.mxu3 %v947_v37  ;;  %v368_v44 = vand.u32 2147483648, %v1825_v47  ;;  %v870_v46 = vld [vmem:[%s2120_s1 + $0x430] sm:$0xff] }
  0xbb   : > { %v366_v55 = vand.u32 2147483647, %v1825_v47  ;;  %631 = vmatpush.msrb.mxu0 %v870_v46  ;;  %671 = vmatpush.msrb.mxu2 %v871_v56 }
  0xbc   : > { %1045 = vrcp.f32 %v1830_v50  ;;  %vm343_vm2 = vweird.f32 %v1830_v50  ;;  %v349_v45 = vand.u32 2147483648, %v1830_v50  ;;  %v347_v53 = vand.u32 2147483647, %v1830_v50  ;;  %689 = vmatpush.msrb.mxu3 %v943_v43  ;;  %651 = vmatpush.msrb.mxu1 %v934_v59 }
  0xbd   : > { %v369_v61 = vor.u32 1.1754944e-38, %v368_v44  ;;  %vm367_vm7 = vcmp.eq.f32.partialorder %v366_v55, 8.507059e+37 }
  0xbe   : > { %v350_v62 = vor.u32 1.1754944e-38, %v349_v45  ;;  %690 = vmatpush.msrb.mxu3 %v939_v57  ;;  %vm348_vm6 = vcmp.eq.f32.partialorder %v347_v53, 8.507059e+37  ;;  %652 = vmatpush.msrb.mxu1 %v930_v63 }
  0xbf   : > { %653 = vmatmul.f32.vlgmr.msrb.gmra.mxu1 %v1102_v2 }
  0xc0   : > { %v1882_v7 = vpop.eup %1043  ;;  %691 = vmatpush.msrb.mxu3 %v935_v60 }
  0xc1   : > { %v358_v11 = vmul.f32 %v1882_v7, %v1825_v47  ;;  %vm363_vm1 = vweird.f32 %v1882_v7  ;;  %v866_v47 = vld [vmem:[%s2120_s1 + $0x410] sm:$0xff] }
  0xc2   : > { %v1890_v10 = vpop.eup %1045  ;;  %v271_v3 = vpop.f32.mrf.mxu0  ;;  %vm1972_vm4 = vmor %vm362_vm0, %vm363_vm1  ;;  %632 = vmatpush.msrb.mxu0 %v866_v47  ;;  %692 = vmatpush.msrb.mxu3 %v931_v6 }
  0xc3   : > { %v339_v16 = vmul.f32 %v1890_v10, %v1830_v50  ;;  %v359_v21 = vsub.f32 1.0, %v358_v11  ;;  %v272_v25 = vadd.f32 %v271_v3, %v168_v12  ;;  %vm344_vm3 = vweird.f32 %v1890_v10  ;;  %v867_v50 = vld [vmem:[%s2120_s1 + $0x418] sm:$0xff]  ;;  %693 = vmatmul.f32.vlgmr.msrb.gmra.mxu3 %v1102_v2 }
  0xc4   : > { %v291_v29 = vpop.f32.mrf.mxu1  ;;  %vm1990_vm5 = vmor %vm343_vm2, %vm344_vm3  ;;  %672 = vmatpush.msrb.mxu2 %v867_v50 }
  0xc5   : > { %v340_v20 = vsub.f32 1.0, %v339_v16  ;;  %v360_v35 = vmul.f32 %v1882_v7, %v359_v21  ;;  %v292_v38 = vadd.f32 %v291_v29, %v272_v25 }
  0xc6   : > { %v311_v22 = vpop.f32.mrf.mxu2 }
  0xc7   : > { %v312_v26 = vadd.f32 %v311_v22, %v169_v13  ;;  %v341_v36 = vmul.f32 %v1890_v10, %v340_v20  ;;  %v361_v54 = vadd.f32 %v1882_v7, %v360_v35 }
  0xc8   : > { %v331_v30 = vpop.f32.mrf.mxu3 }
  0xc9   : > { %v332_v31 = vadd.f32 %v331_v30, %v312_v26  ;;  %v342_v52 = vadd.f32 %v1890_v10, %v341_v36  ;;  %v365_v5 = vsel %vm1972_vm4, %v1882_v7, %v361_v54 }
  0xcb   : > { %v863_v39 = vmul.f32 -1.442695, %v332_v31  ;;  %v346_v4 = vsel %vm1990_vm5, %v1890_v10, %v342_v52  ;;  %v370_v10 = vsel %vm367_vm7, %v369_v61, %v365_v5 }
  0xcc   : > { %v351_v12 = vsel %vm348_vm6, %v350_v62, %v346_v4  ;;  %v392_v7 = vmul.f32 %v1098_v1, %v370_v10 }
  0xcd   : > { %1047 = vpow2.f32 %v863_v39 }
  0xce   : > { %1049 = vtanh.f32 %v292_v38 }
  0xd3   : > { %v1048_v8 = vpop.eup %1047 }
  0xd4   : > { %v376_v9 = vadd.f32 1.0, %v1048_v8  ;;  %v1050_v11 = vpop.eup %1049 }
  0xd5   : > { %v393_v13 = vmul.f32 %v1050_v11, %v351_v12 }
  0xd6   : > { %1051 = vrcp.f32 %v376_v9  ;;  %v388_v49 = vand.u32 2147483648, %v376_v9  ;;  %v386_v18 = vand.u32 2147483647, %v376_v9  ;;  %vm382_vm9 = vweird.f32 %v376_v9 }
  0xd7   : > { %v2021_v1 = vadd.f32 %v393_v13, %v392_v7  }
  0xd8   : > { %v389_v20 = vor.u32 1.1754944e-38, %v388_v49  ;;  %vm387_vm11 = vcmp.eq.f32.partialorder %v386_v18, 8.507059e+37 }
  0xd9   : > { %v2131_v15 = vmov %v2021_v1  ;;  %v992_v1 = vld [vmem:[%s2121_s2 + $0x4] sm:$0xf] }
  0xda   : > { %1053 = vtanh.f32 %v2131_v15  ;;  %v529_v24 = vperm.slane %v992_v1, 0  ;;  %v530_v29 = vperm.slane %v992_v1, 1  ;;  %v532_v36 = vperm.slane %v992_v1, 3  ;;  %778 = vst [vmem:[%s2126_s7] sm:$0xff] (%p25_p0), %v2131_v15 }
  0xdb   : > { %v531_v46 = vperm.slane %v992_v1, 2 }
  0xdc   : > { %v1052_v14 = vpop.eup %1051 }
  0xdd   : > { %v378_v16 = vmul.f32 %v1052_v14, %v376_v9  ;;  %vm383_vm8 = vweird.f32 %v1052_v14 }
  0xde   : > { %vm384_vm10 = vmor %vm382_vm9, %vm383_vm8 }
  0xdf   : > { %v379_v3 = vsub.f32 1.0, %v378_v16 }
  0xe0   : > { %v1054_v2 = vpop.eup %1053 }
  0xe1   : > { %v380_v17 = vmul.f32 %v1052_v14, %v379_v3 }
  0xe3   : > { %v381_v19 = vadd.f32 %v1052_v14, %v380_v17 }
  0xe5   : > { %v385_v21 = vsel %vm384_vm10, %v1052_v14, %v381_v19 }
  0xe6   : > { %v390_v22 = vsel %vm387_vm11, %v389_v20, %v385_v21 }
  0xe7   : > { %v2024_v3 = vmul.f32 %v1054_v2, %v390_v22  }
  0xe9   : > { %v2132_v23 = vmov %v2024_v3 }
  0xea   : > { %553 = vmatmul.f32.vlgmr.msra.gmra.mxu0 %v2132_v23  ;;  %593 = vmatmul.f32.vlgmr.msra.gmra.mxu2 %v2132_v23  ;;  %777 = vst [vmem:[%s2125_s6] sm:$0xff] (%p25_p0), %v2132_v23 }
  0xf0   : > { %v574_v26 = vpop.f32.mrf.mxu1 }
  0xf2   : > { %633 = vmatmul.f32.vlgmr.msrb.gmra.mxu0 %v2132_v23  ;;  %673 = vmatmul.f32.vlgmr.msrb.gmra.mxu2 %v2132_v23 }
  0xf7   : > { %v614_v30 = vpop.f32.mrf.mxu3 }
 0x13c   : > { %v654_v55 = vpop.f32.mrf.mxu1 }
 0x146   : > { %v694_v40 = vpop.f32.mrf.mxu3 }
 0x167   : > { %v554_v25 = vpop.f32.mrf.mxu0 }
 0x168   : > { %v555_v27 = vadd.f32 %v554_v25, %v529_v24 }
 0x16a   : > { %v575_v28 = vadd.f32 %v574_v26, %v555_v27 }
 0x16c   : > { %v993_v31 = vmul.f32 -1.442695, %v575_v28  ;;  %v775_v28 = vld [vmem:[%s2122_s3 + $0x78] sm:$0xff] (%p25_p0) }
 0x16d   : > { %v594_v32 = vpop.f32.mrf.mxu2  ;;  %782 = vmatpush.msra.mxu0 (%p25_p0), %v775_v28  ;;  %807 = vmatpush.msra.mxu1 (%p25_p0), %v775_v28 }
 0x16e   : > { %1055 = vpow2.f32 %v993_v31  ;;  %v595_v33 = vadd.f32 %v594_v32, %v530_v29  ;;  %v774_v29 = vld [vmem:[%s2122_s3 + $0x70] sm:$0xff] (%p25_p0)  ;;  %v769_v32 = vld [vmem:[%s2122_s3 + $0x48] sm:$0xff] (%p25_p0) }
 0x16f   : > { %v634_v48 = vpop.f32.mrf.mxu0  ;;  %783 = vmatpush.msra.mxu0 (%p25_p0), %v774_v29  ;;  %808 = vmatpush.msra.mxu1 (%p25_p0), %v774_v29  ;;  %v770_v31 = vld [vmem:[%s2122_s3 + $0x50] sm:$0xff] (%p25_p0) }
 0x170   : > { %v615_v34 = vadd.f32 %v614_v30, %v595_v33  ;;  %v635_v53 = vadd.f32 %v634_v48, %v531_v46  ;;  %v771_v30 = vld [vmem:[%s2122_s3 + $0x58] sm:$0xff] (%p25_p0)  ;;  %v768_v33 = vld [vmem:[%s2122_s3 + $0x40] sm:$0xff] (%p25_p0) }
 0x172   : > { %v994_v35 = vmul.f32 -1.442695, %v615_v34  ;;  %v655_v47 = vadd.f32 %v654_v55, %v635_v53  ;;  %v767_v34 = vld [vmem:[%s2122_s3 + $0x38] sm:$0xff] (%p25_p0) }
 0x174   : > { %v1056_v37 = vpop.eup %1055  ;;  %1057 = vpow2.f32 %v994_v35  ;;  %v766_v35 = vld [vmem:[%s2122_s3 + $0x30] sm:$0xff] (%p25_p0) }
 0x175   : > { %v700_v38 = vadd.f32 1.0, %v1056_v37  ;;  %v674_v39 = vpop.f32.mrf.mxu2  ;;  %v764_v37 = vld [vmem:[%s2122_s3 + $0x20] sm:$0xff] (%p25_p0) }
 0x176   : > { %v675_v41 = vadd.f32 %v674_v39, %v532_v36  ;;  %v765_v36 = vld [vmem:[%s2122_s3 + $0x28] sm:$0xff] (%p25_p0)  ;;  %v762_v39 = vld [vmem:[%s2122_s3 + $0x10] sm:$0xff] (%p25_p0) }
 0x177   : > { %1059 = vrcp.f32 %v700_v38  ;;  %v712_v61 = vand.u32 2147483648, %v700_v38  ;;  %vm706_vm13 = vweird.f32 %v700_v38  ;;  %v710_v63 = vand.u32 2147483647, %v700_v38 }
 0x178   : > { %v695_v42 = vadd.f32 %v694_v40, %v675_v41  ;;  %v761_v40 = vld [vmem:[%s2122_s3 + $0x8] sm:$0xff] (%p25_p0)  ;;  %v760_v41 = vld [vmem:[%s2122_s3] sm:$0xff] (%p25_p0) }
 0x179   : > { %v713_v9 = vor.u32 1.1754944e-38, %v712_v61  ;;  %vm711_vm1 = vcmp.eq.f32.partialorder %v710_v63, 8.507059e+37 }
 0x17a   : > { %v1058_v43 = vpop.eup %1057  ;;  %v995_v44 = vmul.f32 -1.442695, %v695_v42  ;;  %v1071_v42 = vld [vmem:[%s2123_s4] ss:$0 sm:$0xff] (%p25_p0) }
 0x17b   : > { %v719_v45 = vadd.f32 1.0, %v1058_v43 }
 0x17c   : > { %1061 = vpow2.f32 %v995_v44 }
 0x17d   : > { %v1060_v51 = vpop.eup %1059  ;;  %1063 = vrcp.f32 %v719_v45  ;;  %v731_v4 = vand.u32 2147483648, %v719_v45  ;;  %v729_v8 = vand.u32 2147483647, %v719_v45  ;;  %vm725_vm0 = vweird.f32 %v719_v45 }
 0x17e   : > { %v702_v52 = vmul.f32 %v1060_v51, %v700_v38  ;;  %vm707_vm12 = vweird.f32 %v1060_v51  ;;  %v763_v38 = vld [vmem:[%s2122_s3 + $0x18] sm:$0xff] (%p25_p0) }
 0x17f   : > { %vm708_vm14 = vmor %vm706_vm13, %vm707_vm12  ;;  %v732_v10 = vor.u32 1.1754944e-38, %v731_v4  ;;  %vm730_vm3 = vcmp.eq.f32.partialorder %v729_v8, 8.507059e+37 }
 0x180   : > { %v703_v54 = vsub.f32 1.0, %v702_v52 }
 0x182   : > { %v1062_v56 = vpop.eup %1061  ;;  %v704_v57 = vmul.f32 %v1060_v51, %v703_v54 }
 0x183   : > { %v1064_v58 = vpop.eup %1063  ;;  %v739_v59 = vadd.f32 1.0, %v1062_v56 }
 0x184   : > { %v721_v50 = vmul.f32 %v1064_v58, %v719_v45  ;;  %v705_v60 = vadd.f32 %v1060_v51, %v704_v57  ;;  %vm726_vm15 = vweird.f32 %v1064_v58 }
 0x185   : > { %1065 = vrcp.f32 %v739_v59  ;;  %vm727_vm2 = vmor %vm725_vm0, %vm726_vm15  ;;  %v751_v2 = vand.u32 2147483648, %v739_v59  ;;  %vm745_vm5 = vweird.f32 %v739_v59  ;;  %v749_v22 = vand.u32 2147483647, %v739_v59 }
 0x186   : > { %v722_v62 = vsub.f32 1.0, %v721_v50  ;;  %1067 = vtanh.f32 %v655_v47  ;;  %v709_v6 = vsel %vm708_vm14, %v1060_v51, %v705_v60 }
 0x187   : > { %v714_v7 = vsel %vm711_vm1, %v713_v9, %v709_v6  ;;  %v752_v24 = vor.u32 1.1754944e-38, %v751_v2  ;;  %vm750_vm7 = vcmp.eq.f32.partialorder %v749_v22, 8.507059e+37 }
 0x188   : > { %v723_v5 = vmul.f32 %v1064_v58, %v722_v62 }
 0x18a   : > { %v724_v11 = vadd.f32 %v1064_v58, %v723_v5 }
 0x18b   : > { %v1066_v12 = vpop.eup %1065 }
 0x18c   : > { %v728_v13 = vsel %vm727_vm2, %v1064_v58, %v724_v11  ;;  %v741_v14 = vmul.f32 %v1066_v12, %v739_v59  ;;  %v1068_v16 = vpop.eup %1067  ;;  %vm746_vm4 = vweird.f32 %v1066_v12 }
 0x18d   : > { %v733_v3 = vsel %vm730_vm3, %v732_v10, %v728_v13  ;;  %v756_v17 = vmul.f32 %v1068_v16, %v714_v7  ;;  %vm747_vm6 = vmor %vm745_vm5, %vm746_vm4 }
 0x18e   : > { %v755_v49 = vmul.f32 %v1094_v0, %v733_v3  ;;  %v742_v18 = vsub.f32 1.0, %v741_v14  ;;  %v2136_v3 = vmov %v2132_v23 }
 0x190   : > { %v757_v19 = vadd.f32 %v756_v17, %v755_v49   ;;  %v743_v20 = vmul.f32 %v1066_v12, %v742_v18 }
 0x192   : > { %1069 = vtanh.f32 %v757_v19  ;;  %v744_v21 = vadd.f32 %v1066_v12, %v743_v20  ;;  %v2133_v0 = vmov %v757_v19  ;;  %997 = vst [vmem:[%s2126_s7 + $0x8] sm:$0xff] (%p25_p0), %v757_v19 }
 0x193   :  { %v773_v0 = vld [vmem:[%s2122_s3 + $0x68] sm:$0xff] (%p25_p0) }
 0x194   : > { %v748_v1 = vsel %vm747_vm6, %v1066_v12, %v744_v21  ;;  %784 = vmatpush.msra.mxu0 (%p25_p0), %v773_v0  ;;  %809 = vmatpush.msra.mxu1 (%p25_p0), %v773_v0 }
 0x195   : > { %v753_v26 = vsel %vm750_vm7, %v752_v24, %v748_v1  ;;  %v2134_v1 = vmov %v2131_v15  ;;  %v772_v15 = vld [vmem:[%s2122_s3 + $0x60] sm:$0xff] (%p25_p0) }
 0x196   :  { %785 = vmatpush.msra.mxu0 (%p25_p0), %v772_v15  ;;  %810 = vmatpush.msra.mxu1 (%p25_p0), %v772_v15 }
 0x197   :  { %27 = sbr.rel (!%p25_p0) target bundleno = 1 (0x1), region = 69 }
 0x198   : > { %v1070_v25 = vpop.eup %1069  ;;  %786 = vmatpush.msra.mxu0 (%p25_p0), %v771_v30  ;;  %811 = vmatpush.msra.mxu1 (%p25_p0), %v771_v30 }
 0x199   : > { %v759_v27 = vmul.f32 %v1070_v25, %v753_v26  }
 0x19a   :  { %787 = vmatpush.msra.mxu0 (%p25_p0), %v770_v31  ;;  %812 = vmatpush.msra.mxu1 (%p25_p0), %v770_v31 }
 0x19b   : > { %v2135_v2 = vmov %v759_v27  ;;  %996 = vst [vmem:[%s2125_s6 + $0x8] sm:$0xff] (%p25_p0), %v759_v27 }
 0x19c   :  { %788 = vmatpush.msra.mxu0 %v769_v32  ;;  %813 = vmatpush.msra.mxu1 %v769_v32 }
 0x19e   :  { %789 = vmatpush.msra.mxu0 %v768_v33  ;;  %814 = vmatpush.msra.mxu1 %v768_v33 }
 0x1a0   :  { %790 = vmatpush.msra.mxu0 %v767_v34  ;;  %815 = vmatpush.msra.mxu1 %v767_v34 }
 0x1a2   :  { %791 = vmatpush.msra.mxu0 %v766_v35  ;;  %816 = vmatpush.msra.mxu1 %v766_v35 }
 0x1a4   :  { %792 = vmatpush.msra.mxu0 %v765_v36  ;;  %817 = vmatpush.msra.mxu1 %v765_v36 }
 0x1a6   :  { %793 = vmatpush.msra.mxu0 %v764_v37  ;;  %818 = vmatpush.msra.mxu1 %v764_v37 }
 0x1a8   :  { %794 = vmatpush.msra.mxu0 %v763_v38  ;;  %819 = vmatpush.msra.mxu1 %v763_v38 }
 0x1aa   :  { %795 = vmatpush.msra.mxu0 %v762_v39  ;;  %820 = vmatpush.msra.mxu1 %v762_v39 }
 0x1ac   :  { %796 = vmatpush.msra.mxu0 %v761_v40  ;;  %821 = vmatpush.msra.mxu1 %v761_v40 }
 0x1ae   :  { %797 = vmatpush.msra.mxu0 %v760_v41  ;;  %822 = vmatpush.msra.mxu1 %v760_v41 }
 0x1af   :  { %798 = vmatmul.f32.vlgmr.msra.gmra.mxu0 %v2132_v23  ;;  %823 = vmatmul.f32.vlgmr.msra.gmra.mxu1 %v759_v27 }
 0x22c   :  { %v799_v43 = vpop.f32.mrf.mxu0  ;;  %v824_v44 = vpop.f32.mrf.mxu1 }
 0x22d   :  { %v800_v45 = vadd.f32 %v1071_v42, %v799_v43  ;;  %v825_v46 = vadd.f32 %v1071_v42, %v824_v44 }
 0x22f   :  { %802 = vst [vmem:[%s2124_s5] sm:$0xff] %v800_v45 }
 0x230   :  { %998 = vst [vmem:[%s2124_s5 + $0x8] sm:$0xff] %v825_v46 }

</bundles_post_ra>
